<compile_context>
chip_gen: v7x
topology: tpu7x:2x2x1
jax: 0.10.0
libtpu: 0.0.40
codegen_flags: <defaults>
</compile_context>

<pallas_src>
import jax
import jax.numpy as jnp
from jax import lax
from jax.experimental import pallas as pl
from jax.experimental.pallas import tpu as pltpu

EPS = 1e-5  # nn.LayerNorm default


def prenorm_linear_kernel(x_ref, g_ref, b_ref, w_ref, wb_ref, o_ref):
    # x_ref : (tm, D)  row tile
    # g_ref : (1, D)   LayerNorm gamma (f32, pre-cast)
    # b_ref : (1, D)   LayerNorm beta  (f32, pre-cast)
    # w_ref : (D, tn)  fn weight tile in its native dtype (bf16 feeds MXU directly)
    # wb_ref: (1, tn)  fn bias tile (f32, pre-cast)
    # o_ref : (tm, tn) output tile
    x = x_ref[...].astype(jnp.float32)
    inv_d = 1.0 / x_ref.shape[-1]

    # Single-pass LayerNorm statistics: E[x] and E[x^2] together (one XLU pass).
    s1 = jnp.sum(x, axis=-1, keepdims=True)
    s2 = jnp.sum(x * x, axis=-1, keepdims=True)
    mean = s1 * inv_d
    var = s2 * inv_d - mean * mean          # biased variance, like nn.LayerNorm
    y = (x - mean) * lax.rsqrt(var + EPS)
    y = y * g_ref[...] + b_ref[...]

    # Matmul in the weight's native dtype, f32 accumulation on the MXU.
    out = jnp.dot(y.astype(w_ref.dtype), w_ref[...],
                  preferred_element_type=jnp.float32)
    out = out + wb_ref[...]
    o_ref[...] = out.astype(o_ref.dtype)


def _round_up(x, m):
    return ((x + m - 1) // m) * m


def _vmem_capacity_bytes():
    """Per-core VMEM capacity, or None if it cannot be queried."""
    try:
        info = pltpu.get_tpu_info()
        cap = getattr(info, "vmem_capacity_bytes", None)
        if cap:
            return int(cap)
    except Exception:
        pass
    return None


def _choose_config(R, D, N, x_bytes, w_bytes, out_bytes, sub_m, block_budget):
    """Pick (tiled_n, tm, tn) from an explicit double-buffered VMEM footprint."""
    misc = 2 * (2 * D * 4 + 256 * 4)          # gamma/beta (f32) + bias, double-buffered
    R_sub = _round_up(max(R, 1), sub_m)

    # --- Path A: full weight resident in VMEM, 1-D grid over rows. ---
    w_resident = 2 * D * N * w_bytes           # Pallas double-buffers every input block
    per_row = 2 * (D * x_bytes + N * out_bytes)
    if w_resident + misc + per_row * sub_m <= block_budget:
        tm_cap = (block_budget - w_resident - misc) // per_row
        tm = int(min(tm_cap, 1024, R_sub))
        tm = max(sub_m, (tm // sub_m) * sub_m)
        return dict(tiled_n=False, tm=tm, tn=N)

    # --- Path B: tile N. N axis is the OUTER grid axis, so the (D, tn) weight
    # block stays resident across the inner row loop; only x is re-streamed
    # (R*D*x_bytes*(N/tn - 1) extra, which is cheaper than re-streaming a weight
    # that is too big for VMEM). LayerNorm is recomputed per step (overlaps MXU).
    for tm in (512, 256, 128, 64, 32, 16, 8):
        tm = max(sub_m, (min(tm, R_sub) // sub_m) * sub_m)
        for g in (256, 128):                   # prefer MXU-width (256) tiles on v6e/v7x
            denom = 2 * (D * w_bytes + tm * out_bytes)
            tn_cap = (block_budget - misc - 2 * tm * D * x_bytes) // denom
            tn = int(min(tn_cap, 2048, _round_up(N, g)))
            tn = (tn // g) * g
            if tn >= g:
                return dict(tiled_n=True, tm=tm, tn=tn)
    # Last resort: smallest legal, lane-dense tiles.
    return dict(tiled_n=True, tm=sub_m, tn=128)


def prenorm_linear(x, gamma, beta, w, wb):
    """PreNorm with fn == Linear(D, N).  x: (..., D) -> (..., N)."""
    *lead, D = x.shape
    assert w.shape[0] == D
    N = w.shape[1]

    xf = x.reshape(-1, D)
    R = xf.shape[0]

    x_bytes = xf.dtype.itemsize
    w_bytes = w.dtype.itemsize
    out_bytes = x.dtype.itemsize
    # dtype-correct minimum sublane multiple for the row tile
    sub_m = {4: 8, 2: 16, 1: 32}.get(x_bytes, 8)

    cap = _vmem_capacity_bytes()
    if cap is None:
        block_budget = 16 * 1024 * 1024        # conservative, works on any generation
        vmem_limit = None
    else:
        block_budget = int(cap * 0.60)         # blocks (double-buffered) footprint budget
        vmem_limit = int(cap * 0.75)           # ~48 MiB on v7x, ~96 MiB on v5e/v6e

    cfg = _choose_config(R, D, N, x_bytes, w_bytes, out_bytes, sub_m, block_budget)
    tm, tn = cfg["tm"], cfg["tn"]

    R_pad = _round_up(R, tm)
    if R_pad != R:
        xf = jnp.pad(xf, ((0, R_pad - R), (0, 0)))

    # Cast affine params / bias to f32 once, outside the kernel (no per-step casts).
    gamma_f = gamma.reshape(1, D).astype(jnp.float32)
    beta_f = beta.reshape(1, D).astype(jnp.float32)
    wb_f = wb.reshape(1, N).astype(jnp.float32)

    if not cfg["tiled_n"]:
        # Path A: weight resident across all row tiles (constant block index).
        N_pad = N
        w_p, wb_p = w, wb_f
        grid = (R_pad // tm,)
        in_specs = [
            pl.BlockSpec((tm, D), lambda i: (i, 0)),   # x rows
            pl.BlockSpec((1, D), lambda i: (0, 0)),    # gamma
            pl.BlockSpec((1, D), lambda i: (0, 0)),    # beta
            pl.BlockSpec((D, N), lambda i: (0, 0)),    # weight: DMA'd once, resident
            pl.BlockSpec((1, N), lambda i: (0, 0)),    # bias
        ]
        out_specs = pl.BlockSpec((tm, N), lambda i: (i, 0))
        dims = ("parallel",)
    else:
        # Path B: N-tiled, N axis OUTER so the weight tile is resident across
        # the inner row loop; every output block is written exactly once, so
        # both axes are independent ("parallel" -> megacore-shardable).
        N_pad = _round_up(N, tn)
        w_p = jnp.pad(w, ((0, 0), (0, N_pad - N))) if N_pad != N else w
        wb_p = jnp.pad(wb_f, ((0, 0), (0, N_pad - N))) if N_pad != N else wb_f
        grid = (N_pad // tn, R_pad // tm)              # (j outer, i inner)
        in_specs = [
            pl.BlockSpec((tm, D), lambda j, i: (i, 0)),
            pl.BlockSpec((1, D), lambda j, i: (0, 0)),
            pl.BlockSpec((1, D), lambda j, i: (0, 0)),
            pl.BlockSpec((D, tn), lambda j, i: (0, j)),
            pl.BlockSpec((1, tn), lambda j, i: (0, j)),
        ]
        out_specs = pl.BlockSpec((tm, tn), lambda j, i: (i, j))
        dims = ("parallel", "parallel")

    cost = pl.CostEstimate(
        flops=int(2 * R_pad * D * N_pad),
        transcendentals=int(R_pad),
        bytes_accessed=int(R_pad * D * x_bytes + D * N_pad * w_bytes
                           + R_pad * N_pad * out_bytes),
    )

    out = pl.pallas_call(
        prenorm_linear_kernel,
        out_shape=jax.ShapeDtypeStruct((R_pad, N_pad), x.dtype),
        grid_spec=pltpu.PrefetchScalarGridSpec(
            num_scalar_prefetch=0,
            grid=grid,
            in_specs=in_specs,
            out_specs=out_specs,
        ),
        compiler_params=pltpu.CompilerParams(
            dimension_semantics=dims,
            vmem_limit_bytes=vmem_limit,
        ),
        cost_estimate=cost,
    )(xf, gamma_f, beta_f, w_p, wb_p)

    if R_pad != R or N_pad != N:
        out = out[:R, :N]
    return out.reshape(*lead, N)


def prenorm_linear_ref(x, gamma, beta, w, wb):
    xf = x.astype(jnp.float32)
    mean = jnp.mean(xf, axis=-1, keepdims=True)
    var = jnp.mean((xf - mean) ** 2, axis=-1, keepdims=True)
    y = (xf - mean) * lax.rsqrt(var + EPS)
    y = y * gamma.astype(jnp.float32) + beta.astype(jnp.float32)
    out = jnp.dot(y.astype(w.dtype), w, preferred_element_type=jnp.float32)
    out = out + wb.astype(jnp.float32)
    return out.astype(x.dtype)


if __name__ == "__main__":
    # Small shapes consistent with the module; D=128 keeps everything lane-dense.
    B, S, D = 2, 8, 128

    key = jax.random.PRNGKey(0)
    kx, kw, kb = jax.random.split(key, 3)

    x = jax.random.normal(kx, (B, S, D), dtype=jnp.float32)
    # nn.LayerNorm init: gamma=1, beta=0.
    gamma = jnp.ones((D,), dtype=jnp.float32)
    beta = jnp.zeros((D,), dtype=jnp.float32)
    # fn == Linear(D, D), deterministic small random weights.
    # TODO(synk): PreNorm's `fn` is an arbitrary wrapped module; only the
    # Linear(dim, dim) instantiation is fused here.
    w = jax.random.normal(kw, (D, D), dtype=jnp.float32) * 0.02
    wb = jax.random.normal(kb, (D,), dtype=jnp.float32) * 0.02

    out = prenorm_linear(x, gamma, beta, w, wb)
    out = jax.block_until_ready(out)

    ref = prenorm_linear_ref(x, gamma, beta, w, wb)
    assert out.shape == (B, S, D)
    max_err = float(jnp.max(jnp.abs(out - ref)))
    assert jnp.allclose(out, ref, atol=1e-4, rtol=1e-4), \
        f"mismatch vs reference (max err {max_err})"

    print("KERNEL_OK")
</pallas_src>

<mosaic_0001>
module attributes {stable_mosaic.version = 11 : i64} {
  func.func @prenorm_linear_kernel(%arg0: i32, %arg1: memref<16x128xf32, #tpu.memory_space<vmem>>, %arg2: memref<1x128xf32, #tpu.memory_space<vmem>>, %arg3: memref<1x128xf32, #tpu.memory_space<vmem>>, %arg4: memref<128x128xf32, #tpu.memory_space<vmem>>, %arg5: memref<1x128xf32, #tpu.memory_space<vmem>>, %arg6: memref<16x128xf32, #tpu.memory_space<vmem>>) attributes {dimension_semantics = [#tpu.dimension_semantics<parallel>], iteration_bounds = array<i64: 1>, scalar_prefetch = 0 : i64, scratch_operands = 0 : i64, tpu.core_type = #tpu.core_type<tc>, window_params = [{transform_indices = @transform_0, window_bounds = array<i64: 16, 128>}, {pipeline_mode = #tpu.pipeline_mode<synchronous>, transform_indices = @transform_1, window_bounds = array<i64: 1, 128>}, {pipeline_mode = #tpu.pipeline_mode<synchronous>, transform_indices = @transform_2, window_bounds = array<i64: 1, 128>}, {pipeline_mode = #tpu.pipeline_mode<synchronous>, transform_indices = @transform_3, window_bounds = array<i64: 128, 128>}, {pipeline_mode = #tpu.pipeline_mode<synchronous>, transform_indices = @transform_4, window_bounds = array<i64: 1, 128>}, {transform_indices = @transform_5, window_bounds = array<i64: 16, 128>}]} {
    %c0 = arith.constant 0 : index
    %c0_0 = arith.constant 0 : index
    %0 = vector.load %arg1[%c0, %c0_0] : memref<16x128xf32, #tpu.memory_space<vmem>>, vector<16x128xf32>
    %cst = arith.constant dense<0.000000e+00> : vector<16xf32>
    %1 = vector.multi_reduction <add>, %0, %cst [1] : vector<16x128xf32> to vector<16xf32>
    %2 = vector.shape_cast %1 : vector<16xf32> to vector<16x1xf32>
    %3 = arith.mulf %0, %0 : vector<16x128xf32>
    %cst_1 = arith.constant dense<0.000000e+00> : vector<16xf32>
    %4 = vector.multi_reduction <add>, %3, %cst_1 [1] : vector<16x128xf32> to vector<16xf32>
    %5 = vector.shape_cast %4 : vector<16xf32> to vector<16x1xf32>
    %cst_2 = arith.constant 7.812500e-03 : f32
    %6 = vector.broadcast %cst_2 : f32 to vector<16x1xf32>
    %7 = arith.mulf %2, %6 : vector<16x1xf32>
    %cst_3 = arith.constant 7.812500e-03 : f32
    %8 = vector.broadcast %cst_3 : f32 to vector<16x1xf32>
    %9 = arith.mulf %5, %8 : vector<16x1xf32>
    %10 = arith.mulf %7, %7 : vector<16x1xf32>
    %11 = arith.subf %9, %10 : vector<16x1xf32>
    %12 = vector.broadcast %7 : vector<16x1xf32> to vector<16x128xf32>
    %13 = arith.subf %0, %12 : vector<16x128xf32>
    %cst_4 = arith.constant 9.99999974E-6 : f32
    %14 = vector.broadcast %cst_4 : f32 to vector<16x1xf32>
    %15 = arith.addf %11, %14 : vector<16x1xf32>
    %16 = math.rsqrt %15 : vector<16x1xf32>
    %17 = vector.broadcast %16 : vector<16x1xf32> to vector<16x128xf32>
    %18 = arith.mulf %13, %17 : vector<16x128xf32>
    %c0_5 = arith.constant 0 : index
    %c0_6 = arith.constant 0 : index
    %19 = vector.load %arg2[%c0_5, %c0_6] : memref<1x128xf32, #tpu.memory_space<vmem>>, vector<1x128xf32>
    %20 = vector.broadcast %19 : vector<1x128xf32> to vector<16x128xf32>
    %21 = arith.mulf %18, %20 : vector<16x128xf32>
    %c0_7 = arith.constant 0 : index
    %c0_8 = arith.constant 0 : index
    %22 = vector.load %arg3[%c0_7, %c0_8] : memref<1x128xf32, #tpu.memory_space<vmem>>, vector<1x128xf32>
    %23 = vector.broadcast %22 : vector<1x128xf32> to vector<16x128xf32>
    %24 = arith.addf %21, %23 : vector<16x128xf32>
    %c0_9 = arith.constant 0 : index
    %c0_10 = arith.constant 0 : index
    %25 = vector.load %arg4[%c0_9, %c0_10] : memref<128x128xf32, #tpu.memory_space<vmem>>, vector<128x128xf32>
    %cst_11 = arith.constant dense<0.000000e+00> : vector<16x128xf32>
    %26 = tpu.matmul %24, %25, %cst_11 {dimension_numbers = #tpu.dot_dimension_numbers<[1], [0], [0], [1], [0, 0, 1, 1], [], []>} : vector<16x128xf32>, vector<128x128xf32>, vector<16x128xf32> -> vector<16x128xf32>
    %c0_12 = arith.constant 0 : index
    %c0_13 = arith.constant 0 : index
    %27 = vector.load %arg5[%c0_12, %c0_13] : memref<1x128xf32, #tpu.memory_space<vmem>>, vector<1x128xf32>
    %28 = vector.broadcast %27 : vector<1x128xf32> to vector<16x128xf32>
    %29 = arith.addf %26, %28 : vector<16x128xf32>
    %c0_14 = arith.constant 0 : index
    %c0_15 = arith.constant 0 : index
    %30 = vector.load %arg6[%c0_14, %c0_15] : memref<16x128xf32, #tpu.memory_space<vmem>>, vector<16x128xf32>
    tpu.vector_store %arg6[%c0_14, %c0_15], %29 {strides = array<i32>} : memref<16x128xf32, #tpu.memory_space<vmem>>, vector<16x128xf32>,
    return
  }
  func.func @transform_0(%arg0: i32) -> (i32, i32) {
    %c0_i32 = arith.constant 0 : i32
    %c0_i32_0 = arith.constant 0 : i32
    return %arg0, %c0_i32 : i32, i32
  }
  func.func @transform_1(%arg0: i32) -> (i32, i32) {
    %c0_i32 = arith.constant 0 : i32
    %c0_i32_0 = arith.constant 0 : i32
    %c0_i32_1 = arith.constant 0 : i32
    return %c0_i32, %c0_i32_0 : i32, i32
  }
  func.func @transform_2(%arg0: i32) -> (i32, i32) {
    %c0_i32 = arith.constant 0 : i32
    %c0_i32_0 = arith.constant 0 : i32
    %c0_i32_1 = arith.constant 0 : i32
    return %c0_i32, %c0_i32_0 : i32, i32
  }
  func.func @transform_3(%arg0: i32) -> (i32, i32) {
    %c0_i32 = arith.constant 0 : i32
    %c0_i32_0 = arith.constant 0 : i32
    %c0_i32_1 = arith.constant 0 : i32
    return %c0_i32, %c0_i32_0 : i32, i32
  }
  func.func @transform_4(%arg0: i32) -> (i32, i32) {
    %c0_i32 = arith.constant 0 : i32
    %c0_i32_0 = arith.constant 0 : i32
    %c0_i32_1 = arith.constant 0 : i32
    return %c0_i32, %c0_i32_0 : i32, i32
  }
  func.func @transform_5(%arg0: i32) -> (i32, i32) {
    %c0_i32 = arith.constant 0 : i32
    %c0_i32_0 = arith.constant 0 : i32
    return %arg0, %c0_i32 : i32, i32
  }
}

</mosaic_0001>

<bundles_post_ra>
// kernel: tpu_custom_call.1
= control target key start
LH: loop header
LB: loop body
LE: loop exit
PB: predicated region body
PF: predicated region fallthrough
CT: control target
= control target key end

     0   :  { %10 = vsyncpa [#allocation3], 0  ;;  %s483_s0 = inlined_call_operand.hbm [shape: f32[16,128], index: 0, kind: input, shape index: {}]   ;;  %s484_s1 = inlined_call_operand.vmem [shape: f32[1,128], index: 1, kind: input, shape index: {}]   ;;  %s485_s2 = inlined_call_operand.vmem [shape: f32[1,128], index: 2, kind: input, shape index: {}]   ;;  %s486_s3 = inlined_call_operand.hbm [shape: f32[128,128], index: 3, kind: input, shape index: {}]   ;;  %s487_s4 = inlined_call_operand.vmem [shape: f32[1,128], index: 4, kind: input, shape index: {}]   ;;  %s488_s5 = inlined_call_operand.hbm [shape: f32[16,128], index: 5, kind: output, shape index: {}]  }
   0x1   :  { %11 = vsyncpa [#allocation6], 0 }
   0x2   :  { %12 = vsyncpa [#allocation4], 0  ;;  %s382_s18 = smov [#allocation2]   ;;  %s310_s22 = scalar_lea.hbm %s483_s0, 256 }
   0x3   :  { %s18_s19 = sshll.u32 %s382_s18, 4  ;;  %p311_p0 = scmp.ne.s32.totalorder %s483_s0, %s310_s22  ;;  %s19_s19 = int_to_ptr.vmem [resolvable:$true] %s18_s19 }
   0x4   :  { %p314_p1 = scmp.lt.u32.totalorder %s310_s22, %s483_s0 }
   0x6   :  { %p316_p2 = pnand %p314_p1, %p311_p0 }
   0x8   :  { %319 = shalt.err (!%p316_p2)
}
   0x9   :  { %s320_s27 = scalar_lea.vmem %s19_s19, 256  ;;  %p325_p4 = scmp.lt.s32.totalorder %s19_s19, %s19_s19 }
   0xa   :  { %p321_p3 = scmp.ne.s32.totalorder %s19_s19, %s320_s27  ;;  %p326_p5 = scmp.lt.s32.totalorder %s320_s27, %s320_s27 }
   0xc   :  { %p327_p6 = por %p326_p5, %p325_p4 }
   0xe   :  { %p328_p7 = pnand %p327_p6, %p321_p3 }
  0x10   :  { %331 = shalt.err (!%p328_p7)
}
  0x11   :  { %s383_s28 = smov 128   ;;  %s384_s29 = smov 8  }
  0x12   :  { %24 = dma.hbm_to_vmem [thread:$0]  %s483_s0, 256, %s19_s19, [#allocation3], %s383_s28, %s383_s28, %s384_s29  }
  0x13   :  { %s385_s7 = smov [#allocation5]   ;;  %s332_s11 = scalar_lea.hbm %s486_s3, 2048 }
  0x14   :  { %s34_s8 = sshll.u32 %s385_s7, 4  ;;  %p333_p8 = scmp.ne.s32.totalorder %s486_s3, %s332_s11  ;;  %s35_s8 = int_to_ptr.vmem [resolvable:$true] %s34_s8 }
  0x15   :  { %p336_p9 = scmp.lt.u32.totalorder %s332_s11, %s486_s3 }
  0x17   :  { %p338_p10 = pnand %p336_p9, %p333_p8 }
  0x19   :  { %341 = shalt.err (!%p338_p10)
}
  0x1a   :  { %s342_s16 = scalar_lea.vmem %s35_s8, 2048  ;;  %p347_p12 = scmp.lt.s32.totalorder %s35_s8, %s35_s8 }
  0x1b   :  { %p343_p11 = scmp.ne.s32.totalorder %s35_s8, %s342_s16  ;;  %p348_p13 = scmp.lt.s32.totalorder %s342_s16, %s342_s16 }
  0x1d   :  { %p349_p0 = por %p348_p13, %p347_p12 }
  0x1f   :  { %p350_p1 = pnand %p349_p0, %p343_p11 }
  0x21   :  { %353 = shalt.err (!%p350_p1)
}
  0x22   :  { %40 = dma.hbm_to_vmem [thread:$0]  %s486_s3, 2048, %s35_s8, [#allocation6], %s383_s28, %s383_s28, %s384_s29  }
  0x23   :  { %376 = dma.done.wait [#allocation3], 256  }
  0x24   :  { %377 = vsyncadd [#allocation3], 4294967040 }
  0x25   :  { %378 = dma.done.wait [#allocation6], 2048  }
  0x26   :  { %379 = vsyncadd [#allocation6], 4294965248  ;;  %v447_v0 = vld [vmem:[#allocation2] sm:$0xff]  ;;  %v449_v1 = vld [vmem:[#allocation2 + $0x8] sm:$0xff] }
  0x27   :  { %v95_v2 = vld [vmem:[#allocation5] sm:$0xff]  ;;  %51 = vadd.xlane.f32.xlu0 %v447_v0  ;;  %v55_v3 = vmul.f32 %v447_v0, %v447_v0  ;;  %v96_v4 = vld [vmem:[#allocation5 + $0x8] sm:$0xff]  ;;  %v56_v6 = vmul.f32 %v449_v1, %v449_v1  ;;  %v97_v7 = vld [vmem:[#allocation5 + $0x10] sm:$0xff] }
  0x28   :  { %v269_v5 = vpack.c.bf16 %v96_v4, %v95_v2  ;;  %v98_v8 = vld [vmem:[#allocation5 + $0x18] sm:$0xff]  ;;  %v99_v10 = vld [vmem:[#allocation5 + $0x20] sm:$0xff]  ;;  %v100_v11 = vld [vmem:[#allocation5 + $0x28] sm:$0xff] }
  0x29   :  { %57 = vadd.xlane.f32.xlu1 %v55_v3  ;;  %v273_v9 = vpack.c.bf16 %v98_v8, %v97_v7  ;;  %v277_v12 = vpack.c.bf16 %v100_v11, %v99_v10  ;;  %v101_v13 = vld [vmem:[#allocation5 + $0x30] sm:$0xff]  ;;  %v102_v14 = vld [vmem:[#allocation5 + $0x38] sm:$0xff]  ;;  %v103_v16 = vld [vmem:[#allocation5 + $0x40] sm:$0xff] }
  0x2a   :  { %270 = vmatprep.subr.bf16.mxu0 %v269_v5  ;;  %v281_v15 = vpack.c.bf16 %v102_v14, %v101_v13  ;;  %v104_v17 = vld [vmem:[#allocation5 + $0x48] sm:$0xff]  ;;  %v105_v19 = vld [vmem:[#allocation5 + $0x50] sm:$0xff]  ;;  %v106_v20 = vld [vmem:[#allocation5 + $0x58] sm:$0xff] }
  0x2b   :  { %53 = vadd.xlane.f32.xlu0 %v449_v1  ;;  %272 = vmatpush3.bf16.msra.mxu0 %v269_v5  ;;  %v285_v18 = vpack.c.bf16 %v104_v17, %v103_v16  ;;  %v107_v21 = vld [vmem:[#allocation5 + $0x60] sm:$0xff]  ;;  %v289_v22 = vpack.c.bf16 %v106_v20, %v105_v19  ;;  %v108_v23 = vld [vmem:[#allocation5 + $0x68] sm:$0xff]  ;;  %v109_v25 = vld [vmem:[#allocation5 + $0x70] sm:$0xff] }
  0x2c   :  { %274 = vmatprep.subr.bf16.mxu0 %v273_v9  ;;  %v293_v24 = vpack.c.bf16 %v108_v23, %v107_v21  ;;  %v110_v26 = vld [vmem:[#allocation5 + $0x78] sm:$0xff]  ;;  %v213_v44 = vld [vmem:[%s484_s1] ss:$0 sm:$0xff]  ;;  %s386_s1 = smov [#allocation7]  }
  0x2d   :  { %59 = vadd.xlane.f32.xlu1 %v56_v6  ;;  %v297_v27 = vpack.c.bf16 %v110_v26, %v109_v25  ;;  %v214_v46 = vld [vmem:[%s485_s2] ss:$0 sm:$0xff]  ;;  %s200_s23 = sshll.u32 %s386_s1, 4  ;;  %s201_s23 = int_to_ptr.vmem [resolvable:$true] %s200_s23 }
  0x2e   :  { %v215_v54 = vld [vmem:[%s487_s4] ss:$0 sm:$0xff]  ;;  %s354_s2 = scalar_lea.vmem %s201_s23, 256  ;;  %p359_p3 = scmp.lt.s32.totalorder %s201_s23, %s201_s23 }
  0x2f   :  { %276 = vmatpush3.bf16.msra.mxu0 %v273_v9  ;;  %p355_p2 = scmp.ne.s32.totalorder %s201_s23, %s354_s2  ;;  %p360_p4 = scmp.lt.s32.totalorder %s354_s2, %s354_s2 }
  0x30   :  { %278 = vmatprep.subr.bf16.mxu0 %v277_v12 }
  0x31   :  { %p361_p5 = por %p360_p4, %p359_p3 }
  0x33   :  { %280 = vmatpush3.bf16.msra.mxu0 %v277_v12  ;;  %p362_p6 = pnand %p361_p5, %p355_p2 }
  0x34   :  { %282 = vmatprep.subr.bf16.mxu0 %v281_v15 }
  0x37   :  { %284 = vmatpush3.bf16.msra.mxu0 %v281_v15 }
  0x38   :  { %286 = vmatprep.subr.bf16.mxu0 %v285_v18 }
  0x3b   :  { %288 = vmatpush3.bf16.msra.mxu0 %v285_v18 }
  0x3c   :  { %290 = vmatprep.subr.bf16.mxu0 %v289_v22 }
  0x3f   :  { %292 = vmatpush3.bf16.msra.mxu0 %v289_v22 }
  0x40   :  { %294 = vmatprep.subr.bf16.mxu0 %v293_v24 }
  0x43   :  { %296 = vmatpush3.bf16.msra.mxu0 %v293_v24 }
  0x44   :  { %298 = vmatprep.subr.bf16.mxu0 %v297_v27 }
  0x47   :  { %300 = vmatpush3.bf16.msra.mxu0 %v297_v27 }
  0xb4   :  { %v52_v28 = vpop.xlane.xlu0 %51 }
  0xb5   :  { %v61_v29 = vmul.f32 0.0078125, %v52_v28 }
  0xb6   :  { %v58_v30 = vpop.xlane.xlu1 %57 }
  0xb7   :  { %v65_v31 = vmul.f32 %v61_v29, %v61_v29  ;;  %v63_v32 = vmul.f32 0.0078125, %v58_v30  ;;  %v69_v42 = vsub.f32 %v447_v0, %v61_v29 }
  0xb8   :  { %v54_v33 = vpop.xlane.xlu0 %53 }
  0xb9   :  { %v67_v34 = vsub.f32 %v63_v32, %v65_v31  ;;  %v62_v35 = vmul.f32 0.0078125, %v54_v33 }
  0xba   :  { %v60_v36 = vpop.xlane.xlu1 %59 }
  0xbb   :  { %v71_v37 = vadd.f32 1e-05, %v67_v34  ;;  %v66_v38 = vmul.f32 %v62_v35, %v62_v35  ;;  %v64_v39 = vmul.f32 0.0078125, %v60_v36  ;;  %v70_v47 = vsub.f32 %v449_v1, %v62_v35 }
  0xbd   :  { %306 = vrsqrt.f32 %v71_v37  ;;  %v68_v40 = vsub.f32 %v64_v39, %v66_v38 }
  0xbf   :  { %v72_v41 = vadd.f32 1e-05, %v68_v40 }
  0xc1   :  { %308 = vrsqrt.f32 %v72_v41 }
  0xc7   :  { %v307_v43 = vpop.eup %306 }
  0xc8   :  { %v75_v45 = vmul.f32 %v307_v43, %v69_v42 }
  0xca   :  { %v84_v48 = vmul.f32 %v213_v44, %v75_v45 }
  0xcb   :  { %v309_v49 = vpop.eup %308 }
  0xcc   :  { %v76_v50 = vmul.f32 %v309_v49, %v70_v47  ;;  %v93_v51 = vadd.f32 %v214_v46, %v84_v48 }
  0xce   :  { %v85_v52 = vmul.f32 %v213_v44, %v76_v50  ;;  %266 = vmatprep.mubr.f32.mxu0 %v93_v51 }
  0xd0   :  { %v94_v53 = vadd.f32 %v214_v46, %v85_v52 }
  0xd2   :  { %267 = vmatmul.mubr.f32.vlgmr.msra.gmra.mrb[0].mxu0 %v94_v53 }
 0x1a5   :  { %v268_v55 = vpop.f32.mrb[0].mxu0 }
 0x1a6   :  { %v190_v56 = vadd.f32 %v268_v55, %v215_v54  ;;  %v184_v57 = vpop.f32.mrb[1].mxu0 }
 0x1a7   :  { %v185_v58 = vadd.f32 %v215_v54, %v184_v57 }
 0x1a8   :  { %194 = vst [vmem:[#allocation7 + $0x8] sm:$0xff] %v190_v56 }
 0x1a9   :  { %193 = vst [vmem:[#allocation7] sm:$0xff] %v185_v58 }
 0x1aa   :  { %365 = shalt.err (!%p362_p6)
}
 0x1ab   :  { %s366_s4 = scalar_lea.hbm %s488_s5, 256 }
 0x1ac   :  { %p367_p7 = scmp.ne.s32.totalorder %s488_s5, %s366_s4  ;;  %p370_p8 = scmp.lt.u32.totalorder %s366_s4, %s488_s5 }
 0x1ae   :  { %p372_p9 = pnand %p370_p8, %p367_p7 }
 0x1b0   :  { %375 = shalt.err (!%p372_p9)
}
 0x1b1   :  { %206 = dma.vmem_to_hbm [thread:$0]  %s201_s23, 256, %s488_s5, [#allocation4], %s383_s28, %s383_s28, %s384_s29  }
 0x1b2   :  { %380 = dma.done.wait [#allocation4], 256  }
 0x1b3   :  { %381 = vsyncadd [#allocation4], 4294967040 }
 0x1b4   :  { %210 = vsyncpa [#allocation3], 1 }
 0x1b5   :  { %211 = vsyncpa [#allocation6], 1 }
 0x1b6   :  { %212 = vsyncpa [#allocation4], 1 }

</bundles_post_ra>
